<compile_context>
chip_gen: v6e
topology: v6e:2x2x1
jax: 0.10.0
libtpu: 0.0.40
codegen_flags: <defaults>
</compile_context>

<pallas_src>
import functools

import jax
import jax.numpy as jnp
from jax.experimental import pallas as pl
from jax.experimental.pallas import tpu as pltpu


def dqn_kernel(x_ref, w1_ref, b1_ref, w2_ref, b2_ref, w3_ref, b3_ref, o_ref):
    # fc1 + ReLU: MXU matmul with f32 accumulation; bias add / ReLU on the VPU in f32.
    h1 = jnp.dot(x_ref[...], w1_ref[...], preferred_element_type=jnp.float32) + b1_ref[...]
    h1 = jnp.maximum(h1, 0.0)

    # fc2 + ReLU: cast the activation back to the weight dtype so bf16 weights keep the
    # MXU in its fast bf16 mode on v6e/v7x (no-op for f32 weights).
    h1 = h1.astype(w2_ref.dtype)
    h2 = jnp.dot(h1, w2_ref[...], preferred_element_type=jnp.float32) + b2_ref[...]
    h2 = jnp.maximum(h2, 0.0)

    # fc3 (no activation). The output block is lane-dense (padded to a multiple of 128
    # columns), so this store is an unmasked vst.
    h2 = h2.astype(w3_ref.dtype)
    o_ref[...] = (
        jnp.dot(h2, w3_ref[...], preferred_element_type=jnp.float32) + b3_ref[...]
    ).astype(o_ref.dtype)


def _round_up(x, m):
    return ((x + m - 1) // m) * m


def dqn_forward(x, w1, b1, w2, b2, w3, b3, *, tb=128, compute_dtype=jnp.float32):
    """DQN MLP forward pass.

    x:  (batch, input_dim) float32
    w*: (in_features, out_features); b*: (1, out_features)
    tb: max batch-tile (rows per grid step). 128+ keeps the MXU well fed; use 512-1024
        for large replay-buffer batches. Small batches shrink the tile automatically.
    compute_dtype: jnp.float32 or jnp.bfloat16 (bf16 recommended on v6e/v7x; matmul
        accumulation stays f32 either way).
    """
    batch, input_dim = x.shape
    hidden = w1.shape[1]
    out_dim = w3.shape[1]

    lane = 128
    sublane = 8
    out_pad = _round_up(max(out_dim, 1), lane)            # lane-dense output width

    # Adapt the batch tile: no point running a 128-row tile for a 16-row inference call.
    tb_eff = max(sublane, min(tb, _round_up(batch, sublane)))
    padded_batch = _round_up(batch, tb_eff)               # whole tiles only

    # Pad batch to a multiple of the tile (padding rows are discarded at the end).
    if padded_batch != batch:
        x = jnp.pad(x, ((0, padded_batch - batch), (0, 0)))

    # Pad w3/b3 to the lane-dense output width (extra columns are zeros, sliced off later).
    if out_pad != out_dim:
        w3 = jnp.pad(w3, ((0, 0), (0, out_pad - out_dim)))
        b3 = jnp.pad(b3, ((0, 0), (0, out_pad - out_dim)))

    # Matmul operands in compute_dtype (bf16 halves DMA bytes + doubles MXU rate on
    # v6e/v7x); biases stay f32 since the bias add / ReLU run in f32 on the VPU.
    xc = x.astype(compute_dtype)
    w1c, w2c, w3c = (w.astype(compute_dtype) for w in (w1, w2, w3))
    b1f, b2f, b3f = (b.astype(jnp.float32) for b in (b1, b2, b3))

    grid = (padded_batch // tb_eff,)

    # Weights/biases: constant index_map -> identical block every grid step, so Pallas
    # keeps them resident in VMEM (single DMA) instead of re-fetching per tile.
    const_spec = lambda shape: pl.BlockSpec(shape, lambda i: (0, 0))

    dt_bytes = jnp.dtype(compute_dtype).itemsize
    flops = 2 * padded_batch * (input_dim * hidden + hidden * hidden + hidden * out_pad)
    bytes_accessed = (
        padded_batch * input_dim * dt_bytes                                    # x
        + (input_dim * hidden + hidden * hidden + hidden * out_pad) * dt_bytes # weights
        + (2 * hidden + out_pad) * 4                                            # biases
        + padded_batch * out_pad * 4                                            # output
    )

    out = pl.pallas_call(
        dqn_kernel,
        out_shape=jax.ShapeDtypeStruct((padded_batch, out_pad), jnp.float32),
        grid_spec=pltpu.PrefetchScalarGridSpec(
            num_scalar_prefetch=0,
            grid=grid,
            in_specs=[
                pl.BlockSpec((tb_eff, input_dim), lambda i: (i, 0)),  # x tile streams
                const_spec((input_dim, hidden)),                      # w1 resident
                const_spec((1, hidden)),                              # b1 resident
                const_spec((hidden, hidden)),                         # w2 resident
                const_spec((1, hidden)),                              # b2 resident
                const_spec((hidden, out_pad)),                        # w3 (lane-padded)
                const_spec((1, out_pad)),                             # b3 (lane-padded)
            ],
            out_specs=pl.BlockSpec((tb_eff, out_pad), lambda i: (i, 0)),
        ),
        compiler_params=pltpu.CompilerParams(
            # Batch tiles are independent -> shard across v7x's 2 TensorCores.
            dimension_semantics=("parallel",),
        ),
        cost_estimate=pl.CostEstimate(
            flops=flops, transcendentals=0, bytes_accessed=bytes_accessed
        ),
    )(xc, w1c, b1f, w2c, b2f, w3c, b3f)

    # Drop batch padding and the zero-padded output lanes.
    return out[:batch, :out_dim]


def init_params(key, input_dim, hidden_dim, output_dim):
    # Deterministic init mimicking PyTorch's default Linear init (uniform +-1/sqrt(fan_in)).
    ks = jax.random.split(key, 6)

    def lin(kw, kb, fan_in, fan_out):
        bound = 1.0 / jnp.sqrt(fan_in)
        w = jax.random.uniform(kw, (fan_in, fan_out), jnp.float32, -bound, bound)
        b = jax.random.uniform(kb, (1, fan_out), jnp.float32, -bound, bound)
        return w, b

    w1, b1 = lin(ks[0], ks[1], input_dim, hidden_dim)
    w2, b2 = lin(ks[2], ks[3], hidden_dim, hidden_dim)
    w3, b3 = lin(ks[4], ks[5], hidden_dim, output_dim)
    return w1, b1, w2, b2, w3, b3


def _reference(x, w1, b1, w2, b2, w3, b3):
    h = jnp.maximum(x @ w1 + b1, 0.0)
    h = jnp.maximum(h @ w2 + b2, 0.0)
    return h @ w3 + b3


if __name__ == "__main__":
    key = jax.random.PRNGKey(0)
    kx, kp = jax.random.split(key)

    # hidden=128 is fixed by the module; small state/action dims typical of DQN.
    batch, input_dim, hidden_dim, output_dim = 16, 32, 128, 4

    x = jax.random.normal(kx, (batch, input_dim), dtype=jnp.float32)
    params = init_params(kp, input_dim, hidden_dim, output_dim)
    ref = _reference(x, *params)

    # f32 compute path (exact-semantics check, small single-tile batch).
    fwd_f32 = jax.jit(functools.partial(dqn_forward, tb=128, compute_dtype=jnp.float32))
    out_f32 = jax.block_until_ready(fwd_f32(x, *params))
    assert out_f32.shape == (batch, output_dim)
    assert jnp.allclose(out_f32, ref, atol=1e-4, rtol=1e-4)

    # bf16 compute path (v6e/v7x MXU fast path; f32 accumulation) - looser tolerance.
    fwd_bf16 = jax.jit(functools.partial(dqn_forward, tb=128, compute_dtype=jnp.bfloat16))
    out_bf16 = jax.block_until_ready(fwd_bf16(x, *params))
    assert out_bf16.shape == (batch, output_dim)
    assert jnp.allclose(out_bf16, ref, atol=5e-2, rtol=5e-2)

    # Odd batch size (not a multiple of 8/tb) handled by wrapper-side padding.
    out_ragged = jax.block_until_ready(dqn_forward(x[:7], *params, tb=128))
    assert out_ragged.shape == (7, output_dim)
    assert jnp.allclose(out_ragged, ref[:7], atol=1e-4, rtol=1e-4)

    # Multi-tile (replay-buffer style) batch exercises the streaming grid path.
    xb = jax.random.normal(kx, (256, input_dim), dtype=jnp.float32)
    refb = _reference(xb, *params)
    out_big = jax.block_until_ready(fwd_f32(xb, *params))
    assert out_big.shape == (256, output_dim)
    assert jnp.allclose(out_big, refb, atol=1e-4, rtol=1e-4)

    print("KERNEL_OK")
</pallas_src>

<mosaic_0001>
module attributes {stable_mosaic.version = 11 : i64} {
  func.func @dqn_kernel(%arg0: i32, %arg1: memref<16x32xf32, #tpu.memory_space<vmem>>, %arg2: memref<32x128xf32, #tpu.memory_space<vmem>>, %arg3: memref<1x128xf32, #tpu.memory_space<vmem>>, %arg4: memref<128x128xf32, #tpu.memory_space<vmem>>, %arg5: memref<1x128xf32, #tpu.memory_space<vmem>>, %arg6: memref<128x128xf32, #tpu.memory_space<vmem>>, %arg7: memref<1x128xf32, #tpu.memory_space<vmem>>, %arg8: memref<16x128xf32, #tpu.memory_space<vmem>>) attributes {dimension_semantics = [#tpu.dimension_semantics<parallel>], iteration_bounds = array<i64: 1>, scalar_prefetch = 0 : i64, scratch_operands = 0 : i64, tpu.core_type = #tpu.core_type<tc>, window_params = [{transform_indices = @transform_0, window_bounds = array<i64: 16, 32>}, {pipeline_mode = #tpu.pipeline_mode<synchronous>, transform_indices = @transform_1, window_bounds = array<i64: 32, 128>}, {pipeline_mode = #tpu.pipeline_mode<synchronous>, transform_indices = @transform_2, window_bounds = array<i64: 1, 128>}, {pipeline_mode = #tpu.pipeline_mode<synchronous>, transform_indices = @transform_3, window_bounds = array<i64: 128, 128>}, {pipeline_mode = #tpu.pipeline_mode<synchronous>, transform_indices = @transform_4, window_bounds = array<i64: 1, 128>}, {pipeline_mode = #tpu.pipeline_mode<synchronous>, transform_indices = @transform_5, window_bounds = array<i64: 128, 128>}, {pipeline_mode = #tpu.pipeline_mode<synchronous>, transform_indices = @transform_6, window_bounds = array<i64: 1, 128>}, {transform_indices = @transform_7, window_bounds = array<i64: 16, 128>}]} {
    %c0 = arith.constant 0 : index
    %c0_0 = arith.constant 0 : index
    %0 = vector.load %arg1[%c0, %c0_0] : memref<16x32xf32, #tpu.memory_space<vmem>>, vector<16x32xf32>
    %c0_1 = arith.constant 0 : index
    %c0_2 = arith.constant 0 : index
    %1 = vector.load %arg2[%c0_1, %c0_2] : memref<32x128xf32, #tpu.memory_space<vmem>>, vector<32x128xf32>
    %cst = arith.constant dense<0.000000e+00> : vector<16x128xf32>
    %2 = tpu.matmul %0, %1, %cst {dimension_numbers = #tpu.dot_dimension_numbers<[1], [0], [0], [1], [0, 0, 1, 1], [], []>} : vector<16x32xf32>, vector<32x128xf32>, vector<16x128xf32> -> vector<16x128xf32>
    %c0_3 = arith.constant 0 : index
    %c0_4 = arith.constant 0 : index
    %3 = vector.load %arg3[%c0_3, %c0_4] : memref<1x128xf32, #tpu.memory_space<vmem>>, vector<1x128xf32>
    %4 = vector.broadcast %3 : vector<1x128xf32> to vector<16x128xf32>
    %5 = arith.addf %2, %4 : vector<16x128xf32>
    %cst_5 = arith.constant 0.000000e+00 : f32
    %6 = vector.broadcast %cst_5 : f32 to vector<16x128xf32>
    %7 = arith.maximumf %5, %6 : vector<16x128xf32>
    %c0_6 = arith.constant 0 : index
    %c0_7 = arith.constant 0 : index
    %8 = vector.load %arg4[%c0_6, %c0_7] : memref<128x128xf32, #tpu.memory_space<vmem>>, vector<128x128xf32>
    %cst_8 = arith.constant dense<0.000000e+00> : vector<16x128xf32>
    %9 = tpu.matmul %7, %8, %cst_8 {dimension_numbers = #tpu.dot_dimension_numbers<[1], [0], [0], [1], [0, 0, 1, 1], [], []>} : vector<16x128xf32>, vector<128x128xf32>, vector<16x128xf32> -> vector<16x128xf32>
    %c0_9 = arith.constant 0 : index
    %c0_10 = arith.constant 0 : index
    %10 = vector.load %arg5[%c0_9, %c0_10] : memref<1x128xf32, #tpu.memory_space<vmem>>, vector<1x128xf32>
    %11 = vector.broadcast %10 : vector<1x128xf32> to vector<16x128xf32>
    %12 = arith.addf %9, %11 : vector<16x128xf32>
    %cst_11 = arith.constant 0.000000e+00 : f32
    %13 = vector.broadcast %cst_11 : f32 to vector<16x128xf32>
    %14 = arith.maximumf %12, %13 : vector<16x128xf32>
    %c0_12 = arith.constant 0 : index
    %c0_13 = arith.constant 0 : index
    %15 = vector.load %arg6[%c0_12, %c0_13] : memref<128x128xf32, #tpu.memory_space<vmem>>, vector<128x128xf32>
    %cst_14 = arith.constant dense<0.000000e+00> : vector<16x128xf32>
    %16 = tpu.matmul %14, %15, %cst_14 {dimension_numbers = #tpu.dot_dimension_numbers<[1], [0], [0], [1], [0, 0, 1, 1], [], []>} : vector<16x128xf32>, vector<128x128xf32>, vector<16x128xf32> -> vector<16x128xf32>
    %c0_15 = arith.constant 0 : index
    %c0_16 = arith.constant 0 : index
    %17 = vector.load %arg7[%c0_15, %c0_16] : memref<1x128xf32, #tpu.memory_space<vmem>>, vector<1x128xf32>
    %18 = vector.broadcast %17 : vector<1x128xf32> to vector<16x128xf32>
    %19 = arith.addf %16, %18 : vector<16x128xf32>
    %c0_17 = arith.constant 0 : index
    %c0_18 = arith.constant 0 : index
    %20 = vector.load %arg8[%c0_17, %c0_18] : memref<16x128xf32, #tpu.memory_space<vmem>>, vector<16x128xf32>
    tpu.vector_store %arg8[%c0_17, %c0_18], %19 {strides = array<i32>} : memref<16x128xf32, #tpu.memory_space<vmem>>, vector<16x128xf32>,
    return
  }
  func.func @transform_0(%arg0: i32) -> (i32, i32) {
    %c0_i32 = arith.constant 0 : i32
    %c0_i32_0 = arith.constant 0 : i32
    return %arg0, %c0_i32 : i32, i32
  }
  func.func @transform_1(%arg0: i32) -> (i32, i32) {
    %c0_i32 = arith.constant 0 : i32
    %c0_i32_0 = arith.constant 0 : i32
    %c0_i32_1 = arith.constant 0 : i32
    return %c0_i32, %c0_i32_0 : i32, i32
  }
  func.func @transform_2(%arg0: i32) -> (i32, i32) {
    %c0_i32 = arith.constant 0 : i32
    %c0_i32_0 = arith.constant 0 : i32
    %c0_i32_1 = arith.constant 0 : i32
    return %c0_i32, %c0_i32_0 : i32, i32
  }
  func.func @transform_3(%arg0: i32) -> (i32, i32) {
    %c0_i32 = arith.constant 0 : i32
    %c0_i32_0 = arith.constant 0 : i32
    %c0_i32_1 = arith.constant 0 : i32
    return %c0_i32, %c0_i32_0 : i32, i32
  }
  func.func @transform_4(%arg0: i32) -> (i32, i32) {
    %c0_i32 = arith.constant 0 : i32
    %c0_i32_0 = arith.constant 0 : i32
    %c0_i32_1 = arith.constant 0 : i32
    return %c0_i32, %c0_i32_0 : i32, i32
  }
  func.func @transform_5(%arg0: i32) -> (i32, i32) {
    %c0_i32 = arith.constant 0 : i32
    %c0_i32_0 = arith.constant 0 : i32
    %c0_i32_1 = arith.constant 0 : i32
    return %c0_i32, %c0_i32_0 : i32, i32
  }
  func.func @transform_6(%arg0: i32) -> (i32, i32) {
    %c0_i32 = arith.constant 0 : i32
    %c0_i32_0 = arith.constant 0 : i32
    %c0_i32_1 = arith.constant 0 : i32
    return %c0_i32, %c0_i32_0 : i32, i32
  }
  func.func @transform_7(%arg0: i32) -> (i32, i32) {
    %c0_i32 = arith.constant 0 : i32
    %c0_i32_0 = arith.constant 0 : i32
    return %arg0, %c0_i32 : i32, i32
  }
}

</mosaic_0001>

<bundles_post_ra>
// kernel: dqn_forward.1
= control target key start
LH: loop header
LB: loop body
LE: loop exit
PB: predicated region body
PF: predicated region fallthrough
CT: control target
= control target key end

     0   :  { %vm39_vm0 = vcmask 261120   ;;  %s626_s1 = inlined_call_operand.vmem [shape: f32[32,128], index: 1, kind: input, shape index: {}]   ;;  %s627_s0 = inlined_call_operand.vmem [shape: f32[16,32], index: 0, kind: input, shape index: {}]   ;;  %s628_s3 = inlined_call_operand.vmem [shape: f32[128,128], index: 3, kind: input, shape index: {}]   ;;  %s629_s5 = inlined_call_operand.vmem [shape: f32[128,128], index: 5, kind: input, shape index: {}]   ;;  %s630_s2 = inlined_call_operand.vmem [shape: f32[1,128], index: 2, kind: input, shape index: {}]   ;;  %s631_s4 = inlined_call_operand.vmem [shape: f32[1,128], index: 4, kind: input, shape index: {}]   ;;  %s632_s6 = inlined_call_operand.vmem [shape: f32[1,128], index: 6, kind: input, shape index: {}]   ;;  %s633_s7 = inlined_call_operand.vmem [shape: f32[16,128], index: 7, kind: output, shape index: {}]  }
   0x1   :  { %v31_v0 = vld [vmem:[%s626_s1 + $0x18] sm:$0xff]  ;;  %v30_v1 = vld [vmem:[%s626_s1 + $0x10] sm:$0xff]  ;;  %v26_v2 = vld [vmem:[%s627_s0] sm:$0xff] }
   0x2   :  { %374 = vmatprep.subr.mxu0 %v31_v0  ;;  %v29_v3 = vld [vmem:[%s626_s1 + $0x8] sm:$0xff]  ;;  %382 = vmatprep.mubr.msk.f32.mxu0 %vm39_vm0, %v26_v2  ;;  %v138_v4 = vld [vmem:[%s628_s3 + $0x78] sm:$0xff]  ;;  %v137_v5 = vld [vmem:[%s628_s3 + $0x70] sm:$0xff] }
   0x3   :  { %375 = vmatpush3.msra.mxu0 %v31_v0  ;;  %385 = vmatprep.subr.mxu1 %v138_v4  ;;  %v28_v6 = vld [vmem:[%s626_s1] sm:$0xff]  ;;  %v136_v7 = vld [vmem:[%s628_s3 + $0x68] sm:$0xff]  ;;  %v134_v10 = vld [vmem:[%s628_s3 + $0x58] sm:$0xff] }
   0x4   :  { %376 = vmatprep.subr.mxu0 %v30_v1  ;;  %386 = vmatpush3.msra.mxu1 %v138_v4  ;;  %v27_v8 = vld [vmem:[%s627_s0 + $0x8] sm:$0xff]  ;;  %v135_v9 = vld [vmem:[%s628_s3 + $0x60] sm:$0xff]  ;;  %v133_v11 = vld [vmem:[%s628_s3 + $0x50] sm:$0xff] }
   0x5   :  { %377 = vmatpush3.msra.mxu0 %v30_v1  ;;  %387 = vmatprep.subr.mxu1 %v137_v5  ;;  %v132_v12 = vld [vmem:[%s628_s3 + $0x48] sm:$0xff]  ;;  %v131_v13 = vld [vmem:[%s628_s3 + $0x40] sm:$0xff]  ;;  %v130_v14 = vld [vmem:[%s628_s3 + $0x38] sm:$0xff] }
   0x6   :  { %378 = vmatprep.subr.mxu0 %v29_v3  ;;  %388 = vmatpush3.msra.mxu1 %v137_v5  ;;  %v129_v15 = vld [vmem:[%s628_s3 + $0x30] sm:$0xff]  ;;  %v128_v16 = vld [vmem:[%s628_s3 + $0x28] sm:$0xff]  ;;  %v127_v17 = vld [vmem:[%s628_s3 + $0x20] sm:$0xff] }
   0x7   :  { %379 = vmatpush3.msra.mxu0 %v29_v3  ;;  %389 = vmatprep.subr.mxu1 %v136_v7  ;;  %v126_v18 = vld [vmem:[%s628_s3 + $0x18] sm:$0xff]  ;;  %v125_v19 = vld [vmem:[%s628_s3 + $0x10] sm:$0xff]  ;;  %v124_v20 = vld [vmem:[%s628_s3 + $0x8] sm:$0xff] }
   0x8   :  { %380 = vmatprep.subr.mxu0 %v28_v6  ;;  %390 = vmatpush3.msra.mxu1 %v136_v7  ;;  %v123_v21 = vld [vmem:[%s628_s3] sm:$0xff]  ;;  %v238_v22 = vld [vmem:[%s629_s5 + $0x78] sm:$0xff]  ;;  %v237_v23 = vld [vmem:[%s629_s5 + $0x70] sm:$0xff] }
   0x9   :  { %381 = vmatpush3.msra.mxu0 %v28_v6  ;;  %391 = vmatprep.subr.mxu1 %v135_v9  ;;  %v236_v24 = vld [vmem:[%s629_s5 + $0x68] sm:$0xff]  ;;  %v235_v25 = vld [vmem:[%s629_s5 + $0x60] sm:$0xff]  ;;  %v234_v26 = vld [vmem:[%s629_s5 + $0x58] sm:$0xff] }
   0xa   :  { %383 = vmatmul.mubr.msk.f32.vlgmr.msra.gmra.mxu0 %vm39_vm0, %v27_v8  ;;  %392 = vmatpush3.msra.mxu1 %v135_v9  ;;  %v233_v27 = vld [vmem:[%s629_s5 + $0x50] sm:$0xff]  ;;  %v232_v28 = vld [vmem:[%s629_s5 + $0x48] sm:$0xff]  ;;  %v231_v29 = vld [vmem:[%s629_s5 + $0x40] sm:$0xff] }
   0xb   :  { %393 = vmatprep.subr.mxu1 %v134_v10  ;;  %420 = vmatprep.subr.mxu0 %v238_v22  ;;  %v230_v30 = vld [vmem:[%s629_s5 + $0x38] sm:$0xff]  ;;  %v229_v31 = vld [vmem:[%s629_s5 + $0x30] sm:$0xff]  ;;  %v228_v32 = vld [vmem:[%s629_s5 + $0x28] sm:$0xff] }
   0xc   :  { %394 = vmatpush3.msra.mxu1 %v134_v10  ;;  %421 = vmatpush3.msra.mxu0 %v238_v22  ;;  %v227_v33 = vld [vmem:[%s629_s5 + $0x20] sm:$0xff]  ;;  %v226_v41 = vld [vmem:[%s629_s5 + $0x18] sm:$0xff]  ;;  %v225_v42 = vld [vmem:[%s629_s5 + $0x10] sm:$0xff] }
   0xd   :  { %395 = vmatprep.subr.mxu1 %v133_v11  ;;  %422 = vmatprep.subr.mxu0 %v237_v23  ;;  %v327_v34 = vld [vmem:[%s630_s2] ss:$0 sm:$0xff]  ;;  %v224_v43 = vld [vmem:[%s629_s5 + $0x8] sm:$0xff] }
   0xe   :  { %396 = vmatpush3.msra.mxu1 %v133_v11  ;;  %423 = vmatpush3.msra.mxu0 %v237_v23  ;;  %v223_v44 = vld [vmem:[%s629_s5] sm:$0xff] }
   0xf   :  { %397 = vmatprep.subr.mxu1 %v132_v12  ;;  %424 = vmatprep.subr.mxu0 %v236_v24  ;;  %v330_v45 = vld [vmem:[%s631_s4] ss:$0 sm:$0xff] }
  0x10   :  { %398 = vmatpush3.msra.mxu1 %v132_v12  ;;  %425 = vmatpush3.msra.mxu0 %v236_v24  ;;  %v331_v52 = vld [vmem:[%s632_s6] ss:$0 sm:$0xff] }
  0x11   :  { %399 = vmatprep.subr.mxu1 %v131_v13  ;;  %426 = vmatprep.subr.mxu0 %v235_v25 }
  0x12   :  { %400 = vmatpush3.msra.mxu1 %v131_v13  ;;  %427 = vmatpush3.msra.mxu0 %v235_v25 }
  0x13   :  { %401 = vmatprep.subr.mxu1 %v130_v14  ;;  %428 = vmatprep.subr.mxu0 %v234_v26 }
  0x14   :  { %402 = vmatpush3.msra.mxu1 %v130_v14  ;;  %429 = vmatpush3.msra.mxu0 %v234_v26 }
  0x15   :  { %403 = vmatprep.subr.mxu1 %v129_v15  ;;  %430 = vmatprep.subr.mxu0 %v233_v27 }
  0x16   :  { %404 = vmatpush3.msra.mxu1 %v129_v15  ;;  %431 = vmatpush3.msra.mxu0 %v233_v27 }
  0x17   :  { %405 = vmatprep.subr.mxu1 %v128_v16  ;;  %432 = vmatprep.subr.mxu0 %v232_v28 }
  0x18   :  { %406 = vmatpush3.msra.mxu1 %v128_v16  ;;  %433 = vmatpush3.msra.mxu0 %v232_v28 }
  0x19   :  { %407 = vmatprep.subr.mxu1 %v127_v17  ;;  %434 = vmatprep.subr.mxu0 %v231_v29 }
  0x1a   :  { %408 = vmatpush3.msra.mxu1 %v127_v17  ;;  %435 = vmatpush3.msra.mxu0 %v231_v29 }
  0x1b   :  { %409 = vmatprep.subr.mxu1 %v126_v18  ;;  %436 = vmatprep.subr.mxu0 %v230_v30 }
  0x1c   :  { %410 = vmatpush3.msra.mxu1 %v126_v18  ;;  %437 = vmatpush3.msra.mxu0 %v230_v30 }
  0x1d   :  { %411 = vmatprep.subr.mxu1 %v125_v19  ;;  %438 = vmatprep.subr.mxu0 %v229_v31 }
  0x1e   :  { %412 = vmatpush3.msra.mxu1 %v125_v19  ;;  %439 = vmatpush3.msra.mxu0 %v229_v31 }
  0x1f   :  { %413 = vmatprep.subr.mxu1 %v124_v20  ;;  %440 = vmatprep.subr.mxu0 %v228_v32 }
  0x20   :  { %414 = vmatpush3.msra.mxu1 %v124_v20  ;;  %441 = vmatpush3.msra.mxu0 %v228_v32 }
  0x21   :  { %415 = vmatprep.subr.mxu1 %v123_v21  ;;  %442 = vmatprep.subr.mxu0 %v227_v33 }
  0x22   :  { %416 = vmatpush3.msra.mxu1 %v123_v21  ;;  %443 = vmatpush3.msra.mxu0 %v227_v33 }
  0x23   :  { %444 = vmatprep.subr.mxu0 %v226_v41 }
  0x24   :  { %445 = vmatpush3.msra.mxu0 %v226_v41 }
  0x25   :  { %446 = vmatprep.subr.mxu0 %v225_v42 }
  0x26   :  { %447 = vmatpush3.msra.mxu0 %v225_v42 }
  0x27   :  { %448 = vmatprep.subr.mxu0 %v224_v43 }
  0x28   :  { %449 = vmatpush3.msra.mxu0 %v224_v43 }
  0x29   :  { %450 = vmatprep.subr.mxu0 %v223_v44 }
  0x2a   :  { %451 = vmatpush3.msra.mxu0 %v223_v44 }
  0xca   :  { %v384_v35 = vpop.f32.mrf.mxu0 }
  0xcb   :  { %v118_v36 = vadd.f32 %v384_v35, %v327_v34 }
  0xcc   :  { %v112_v37 = vpop.f32.mrf.mxu0 }
  0xcd   :  { %v113_v38 = vadd.f32 %v327_v34, %v112_v37  ;;  %v122_v40 = vmax.f32 %v118_v36, 0.0 }
  0xcf   :  { %v121_v39 = vmax.f32 %v113_v38, 0.0 }
  0xd1   :  { %417 = vmatprep.mubr.f32.mxu1 %v121_v39 }
  0xd2   :  { %418 = vmatmul.mubr.f32.vlgmr.msra.gmra.mxu1 %v122_v40 }
 0x192   :  { %v419_v46 = vpop.f32.mrf.mxu1 }
 0x193   :  { %v218_v47 = vadd.f32 %v419_v46, %v330_v45 }
 0x194   :  { %v212_v48 = vpop.f32.mrf.mxu1 }
 0x195   :  { %v213_v49 = vadd.f32 %v330_v45, %v212_v48  ;;  %v222_v51 = vmax.f32 %v218_v47, 0.0 }
 0x197   :  { %v221_v50 = vmax.f32 %v213_v49, 0.0 }
 0x199   :  { %452 = vmatprep.mubr.f32.mxu0 %v221_v50 }
 0x19a   :  { %453 = vmatmul.mubr.f32.vlgmr.msra.gmra.mxu0 %v222_v51 }
 0x25a   :  { %v454_v53 = vpop.f32.mrf.mxu0 }
 0x25b   :  { %v318_v54 = vadd.f32 %v454_v53, %v331_v52 }
 0x25c   :  { %v312_v55 = vpop.f32.mrf.mxu0 }
 0x25d   :  { %322 = vst [vmem:[%s633_s7 + $0x8] sm:$0xff] %v318_v54  ;;  %v313_v56 = vadd.f32 %v331_v52, %v312_v55 }
 0x25f   :  { %321 = vst [vmem:[%s633_s7] sm:$0xff] %v313_v56 }

</bundles_post_ra>
